<compile_context>
chip_gen: v7x
topology: tpu7x:2x2x1
jax: 0.10.0
libtpu: 0.0.40
codegen_flags: <defaults>
</compile_context>

<pallas_src>
import jax
import jax.numpy as jnp
from jax.experimental import pallas as pl
from jax.experimental.pallas import tpu as pltpu


def speaker_kernel(x_ref, w_ref, b_ref, out_ref):
    # One MXU matmul per batch tile: [TB,192] x [192,144] -> [TB,144], f32 accumulate,
    # bias add on the VPU, then a single lane-dense full-block store.
    x = x_ref[...].astype(jnp.bfloat16)            # activations arrive f32, cast at MXU input
    y = jnp.dot(x, w_ref[...], preferred_element_type=jnp.float32)
    out_ref[...] = y + b_ref[...]                  # [1,144] bias broadcasts over rows


def _round_up(n, m):
    return ((n + m - 1) // m) * m


def speaker_model_forward(feat, packed, *, block_b=512):
    """feat: [B, 192] float32. packed: (w_full [192,144] bf16, b_full [1,144] f32)."""
    w_full, b_full = packed
    B = feat.shape[0]

    # Sublane-aligned batch tile (multiple of 8 rows); cap at ceil(B8/2) so the grid
    # has >= 2 steps whenever possible (v7x has 2 TensorCores).
    B8 = _round_up(B, 8)
    tb = max(8, min(_round_up(block_b, 8), _round_up(pl.cdiv(B8, 2), 8)))
    n_blocks = pl.cdiv(B8, tb)
    Bp = n_blocks * tb
    if Bp != B:
        feat = jnp.pad(feat, ((0, Bp - B), (0, 0)))

    fused = pl.pallas_call(
        speaker_kernel,
        out_shape=jax.ShapeDtypeStruct((Bp, 144), jnp.float32),
        grid_spec=pltpu.PrefetchScalarGridSpec(
            num_scalar_prefetch=0,
            grid=(n_blocks,),
            in_specs=[
                pl.BlockSpec((tb, 192), lambda i: (i, 0)),    # activations: tiled
                pl.BlockSpec((192, 144), lambda i: (0, 0)),   # folded weight: VMEM-resident
                pl.BlockSpec((1, 144), lambda i: (0, 0)),     # folded bias:   VMEM-resident
            ],
            out_specs=pl.BlockSpec((tb, 144), lambda i: (i, 0)),
        ),
        compiler_params=pltpu.CompilerParams(
            dimension_semantics=("parallel",),
            vmem_limit_bytes=32 * 1024 * 1024,
        ),
    )(feat, w_full, b_full)

    feat_h = fused[:B, 0:128]       # shared trunk feature (returned by the module)
    out = fused[:B, 128:138]        # fc3 head (10 classes)
    emo_out = fused[:B, 138:143]    # fc5 head (5 classes)
    return out, emo_out, feat_h


def init_params(key):
    """Deterministic synthetic parameters matching nn.Linear shapes.

    Weights are created directly in [in_features, out_features] layout
    (i.e. the transpose of PyTorch's [out, in] convention)."""
    dims = [
        (192, 128),  # fc1
        (128, 128),  # fc_embed
        (128, 128),  # fc
        (128, 128),  # fc2
        (128, 128),  # fc_embed_1
        (128, 10),   # fc3
        (128, 128),  # fc4
        (128, 128),  # fc_embed_2
        (128, 5),    # fc5
    ]
    params = []
    for i, (din, dout) in enumerate(dims):
        kw, kb = jax.random.split(jax.random.fold_in(key, i))
        bound = 1.0 / jnp.sqrt(din)
        w = jax.random.uniform(kw, (din, dout), jnp.float32, -bound, bound)
        b = jax.random.uniform(kb, (1, dout), jnp.float32, -bound, bound)
        params.extend([w, b])
    return params


def pack_params(params):
    """Fold the all-linear network (in f32) into one [192,144] weight + [1,144] bias.

    forward(x):
      feat    = fc(fc_embed(fc1(x)))                     -> cols   0:128
      out     = fc3(fc_embed_1(fc2(feat)))               -> cols 128:138
      emo_out = fc5(fc_embed_2(fc4(feat)))   (ReverseLayerF fwd == identity)
                                                         -> cols 138:143
    """
    (w1, b1, wfe, bfe, wf, bf, w2, b2, wfe1, bfe1,
     w3, b3, w4, b4, wfe2, bfe2, w5, b5) = params

    # Trunk: feat = ((x@w1+b1)@wfe+bfe)@wf+bf = x @ Wt + bt
    Wt = w1 @ wfe @ wf                                   # [192,128]
    bt = (b1 @ wfe + bfe) @ wf + bf                      # [1,128]

    # Branch heads (affine in feat): out = feat @ Wo + bo, emo = feat @ We + be
    Wo = w2 @ wfe1 @ w3                                  # [128,10]
    bo = (b2 @ wfe1 + bfe1) @ w3 + b3                    # [1,10]
    We = w4 @ wfe2 @ w5                                  # [128,5]
    be = (b4 @ wfe2 + bfe2) @ w5 + b5                    # [1,5]

    # Compose heads with the trunk so everything is affine in the raw input x.
    w_full = jnp.zeros((192, 144), jnp.float32)
    w_full = w_full.at[:, 0:128].set(Wt)
    w_full = w_full.at[:, 128:138].set(Wt @ Wo)
    w_full = w_full.at[:, 138:143].set(Wt @ We)

    b_full = jnp.zeros((1, 144), jnp.float32)
    b_full = b_full.at[0, 0:128].set(bt[0])
    b_full = b_full.at[0, 128:138].set((bt @ Wo + bo)[0])
    b_full = b_full.at[0, 138:143].set((bt @ We + be)[0])

    return w_full.astype(jnp.bfloat16), b_full


def reference_forward(feat, params):
    """Pure-JAX f32 reference matching the PyTorch module layer-by-layer."""
    (w1, b1, wfe, bfe, wf, bf, w2, b2, wfe1, bfe1,
     w3, b3, w4, b4, wfe2, bfe2, w5, b5) = params

    def lin(x, w, b):
        return jnp.dot(x, w) + b

    h = lin(feat, w1, b1)
    h = lin(h, wfe, bfe)
    feat_h = lin(h, wf, bf)
    out = lin(lin(lin(feat_h, w2, b2), wfe1, bfe1), w3, b3)
    emo = lin(lin(lin(feat_h, w4, b4), wfe2, bfe2), w5, b5)
    return out, emo, feat_h


if __name__ == "__main__":
    key = jax.random.PRNGKey(0)
    k_feat, k_param = jax.random.split(key)

    params = init_params(k_param)
    packed = pack_params(params)

    # Small demo batch (single grid step).
    B = 8
    feat = jax.random.normal(k_feat, (B, 192), dtype=jnp.float32)
    out, emo_out, feat_out = speaker_model_forward(feat, packed)
    jax.block_until_ready((out, emo_out, feat_out))

    assert out.shape == (B, 10) and emo_out.shape == (B, 5) and feat_out.shape == (B, 128)

    ref_out, ref_emo, ref_feat = reference_forward(feat, params)
    assert jnp.allclose(out, ref_out, atol=3e-2, rtol=3e-2)
    assert jnp.allclose(emo_out, ref_emo, atol=3e-2, rtol=3e-2)
    assert jnp.allclose(feat_out, ref_feat, atol=3e-2, rtol=3e-2)

    # Second run exercising batch padding + a 2-step grid (both v7x cores get work).
    B2 = 100
    feat2 = jax.random.normal(jax.random.fold_in(k_feat, 1), (B2, 192), dtype=jnp.float32)
    out2, emo2, feat_h2 = speaker_model_forward(feat2, packed)
    jax.block_until_ready((out2, emo2, feat_h2))

    assert out2.shape == (B2, 10) and emo2.shape == (B2, 5) and feat_h2.shape == (B2, 128)

    r_out2, r_emo2, r_feat2 = reference_forward(feat2, params)
    assert jnp.allclose(out2, r_out2, atol=3e-2, rtol=3e-2)
    assert jnp.allclose(emo2, r_emo2, atol=3e-2, rtol=3e-2)
    assert jnp.allclose(feat_h2, r_feat2, atol=3e-2, rtol=3e-2)

    print("KERNEL_OK")
</pallas_src>

<mosaic_0001>
module attributes {stable_mosaic.version = 11 : i64} {
  func.func @speaker_kernel(%arg0: i32, %arg1: memref<8x192xf32, #tpu.memory_space<vmem>>, %arg2: memref<192x144xbf16, #tpu.memory_space<vmem>>, %arg3: memref<1x144xf32, #tpu.memory_space<vmem>>, %arg4: memref<8x144xf32, #tpu.memory_space<vmem>>) attributes {dimension_semantics = [#tpu.dimension_semantics<parallel>], iteration_bounds = array<i64: 1>, scalar_prefetch = 0 : i64, scratch_operands = 0 : i64, tpu.core_type = #tpu.core_type<tc>, window_params = [{transform_indices = @transform_0, window_bounds = array<i64: 8, 192>}, {pipeline_mode = #tpu.pipeline_mode<synchronous>, transform_indices = @transform_1, window_bounds = array<i64: 192, 144>}, {pipeline_mode = #tpu.pipeline_mode<synchronous>, transform_indices = @transform_2, window_bounds = array<i64: 1, 144>}, {transform_indices = @transform_3, window_bounds = array<i64: 8, 144>}]} {
    %c0 = arith.constant 0 : index
    %c0_0 = arith.constant 0 : index
    %0 = vector.load %arg1[%c0, %c0_0] : memref<8x192xf32, #tpu.memory_space<vmem>>, vector<8x192xf32>
    %1 = arith.truncf %0 : vector<8x192xf32> to vector<8x192xbf16>
    %c0_1 = arith.constant 0 : index
    %c0_2 = arith.constant 0 : index
    %2 = vector.load %arg2[%c0_1, %c0_2] : memref<192x144xbf16, #tpu.memory_space<vmem>>, vector<192x144xbf16>
    %cst = arith.constant dense<0.000000e+00> : vector<8x144xf32>
    %3 = tpu.matmul %1, %2, %cst {dimension_numbers = #tpu.dot_dimension_numbers<[1], [0], [0], [1], [0, 0, 1, 1], [], []>} : vector<8x192xbf16>, vector<192x144xbf16>, vector<8x144xf32> -> vector<8x144xf32>
    %c0_3 = arith.constant 0 : index
    %c0_4 = arith.constant 0 : index
    %4 = vector.load %arg3[%c0_3, %c0_4] : memref<1x144xf32, #tpu.memory_space<vmem>>, vector<1x144xf32>
    %5 = vector.broadcast %4 : vector<1x144xf32> to vector<8x144xf32>
    %6 = arith.addf %3, %5 : vector<8x144xf32>
    %c0_5 = arith.constant 0 : index
    %c0_6 = arith.constant 0 : index
    %7 = vector.load %arg4[%c0_5, %c0_6] : memref<8x144xf32, #tpu.memory_space<vmem>>, vector<8x144xf32>
    tpu.vector_store %arg4[%c0_5, %c0_6], %6 {strides = array<i32>} : memref<8x144xf32, #tpu.memory_space<vmem>>, vector<8x144xf32>,
    return
  }
  func.func @transform_0(%arg0: i32) -> (i32, i32) {
    %c0_i32 = arith.constant 0 : i32
    %c0_i32_0 = arith.constant 0 : i32
    return %arg0, %c0_i32 : i32, i32
  }
  func.func @transform_1(%arg0: i32) -> (i32, i32) {
    %c0_i32 = arith.constant 0 : i32
    %c0_i32_0 = arith.constant 0 : i32
    %c0_i32_1 = arith.constant 0 : i32
    return %c0_i32, %c0_i32_0 : i32, i32
  }
  func.func @transform_2(%arg0: i32) -> (i32, i32) {
    %c0_i32 = arith.constant 0 : i32
    %c0_i32_0 = arith.constant 0 : i32
    %c0_i32_1 = arith.constant 0 : i32
    return %c0_i32, %c0_i32_0 : i32, i32
  }
  func.func @transform_3(%arg0: i32) -> (i32, i32) {
    %c0_i32 = arith.constant 0 : i32
    %c0_i32_0 = arith.constant 0 : i32
    return %arg0, %c0_i32 : i32, i32
  }
}

</mosaic_0001>

<bundles_post_ra>
// kernel: tpu_custom_call.1
= control target key start
LH: loop header
LB: loop body
LE: loop exit
PB: predicated region body
PF: predicated region fallthrough
CT: control target
= control target key end

     0   :  { %vm176_vm0 = vcmask 523264   ;;  %s438_s0 = inlined_call_operand.vmem [shape: f32[8,192], index: 0, kind: input, shape index: {}]   ;;  %s439_s1 = inlined_call_operand.vmem [shape: bf16[192,144], index: 1, kind: input, shape index: {}]   ;;  %s440_s2 = inlined_call_operand.vmem [shape: f32[1,144], index: 2, kind: input, shape index: {}]   ;;  %s441_s3 = inlined_call_operand.hbm [shape: f32[8,144], index: 3, kind: output, shape index: {}]  }
   0x1   :  { %v264_v0 = vld [vmem:[%s439_s1 + $0x4] ss:$8 sps:$4 sm:$0xff]   ;;  %v266_v1 = vld [vmem:[%s439_s1] ss:$8 sps:$4 sm:$0xff]   ;;  %v267_v2 = vld [vmem:[%s439_s1 + $0x14] ss:$8 sps:$4 sm:$0xff]  }
   0x2   :  { %180 = vmatprep.subr.bf16.mxu0 %v264_v0  ;;  %v269_v3 = vld [vmem:[%s439_s1 + $0x10] ss:$8 sps:$4 sm:$0xff]   ;;  %v270_v4 = vld [vmem:[%s439_s1 + $0x24] ss:$8 sps:$4 sm:$0xff]   ;;  %v272_v5 = vld [vmem:[%s439_s1 + $0x20] ss:$8 sps:$4 sm:$0xff]  }
   0x3   :  { %181 = vmatpush1.bf16.msra.mxu0 %v266_v1  ;;  %v273_v6 = vld [vmem:[%s439_s1 + $0x34] ss:$8 sps:$4 sm:$0xff]   ;;  %v275_v7 = vld [vmem:[%s439_s1 + $0x30] ss:$8 sps:$4 sm:$0xff]   ;;  %v276_v8 = vld [vmem:[%s439_s1 + $0x44] ss:$8 sps:$4 sm:$0xff]  }
   0x4   :  { %182 = vmatprep.subr.bf16.mxu0 %v267_v2  ;;  %v278_v9 = vld [vmem:[%s439_s1 + $0x40] ss:$8 sps:$4 sm:$0xff]   ;;  %v279_v10 = vld [vmem:[%s439_s1 + $0x54] ss:$8 sps:$4 sm:$0xff]  }
   0x5   :  { %v17_v11 = vld [vmem:[%s438_s0 + $0x8] sm:$0xff] }
   0x6   :  { %v19_v12 = vpack.c.bf16 %v17_v11, %v17_v11 }
   0x7   :  { %183 = vmatpush1.bf16.msra.mxu0 %v269_v3 }
   0x8   :  { %184 = vmatprep.subr.bf16.mxu0 %v270_v4 }
   0xb   :  { %185 = vmatpush1.bf16.msra.mxu0 %v272_v5 }
   0xc   :  { %186 = vmatprep.subr.bf16.mxu0 %v273_v6 }
   0xf   :  { %187 = vmatpush1.bf16.msra.mxu0 %v275_v7 }
  0x10   :  { %188 = vmatprep.subr.bf16.mxu0 %v276_v8 }
  0x11   :  { %8 = vsyncpa [#allocation3], 0  ;;  %v281_v13 = vld [vmem:[%s439_s1 + $0x50] ss:$8 sps:$4 sm:$0xff]   ;;  %262 = vmatprep.mubr.msk.bf16.mxu0 %vm176_vm0, %v19_v12  ;;  %v282_v14 = vld [vmem:[%s439_s1 + $0x64] ss:$8 sps:$4 sm:$0xff]   ;;  %v46_v28 = vlaneseq }
  0x12   :  { %v284_v15 = vld [vmem:[%s439_s1 + $0x60] ss:$8 sps:$4 sm:$0xff]   ;;  %v285_v16 = vld [vmem:[%s439_s1 + $0x74] ss:$8 sps:$4 sm:$0xff]   ;;  %v287_v17 = vld [vmem:[%s439_s1 + $0x70] ss:$8 sps:$4 sm:$0xff]  }
  0x13   :  { %189 = vmatpush1.bf16.msra.mxu0 %v278_v9  ;;  %v288_v18 = vld [vmem:[%s439_s1 + $0x84] ss:$8 sps:$4 sm:$0xff]   ;;  %v290_v19 = vld [vmem:[%s439_s1 + $0x80] ss:$8 sps:$4 sm:$0xff]   ;;  %v291_v20 = vld [vmem:[%s439_s1 + $0x94] ss:$8 sps:$4 sm:$0xff]  }
  0x14   :  { %190 = vmatprep.subr.bf16.mxu0 %v279_v10  ;;  %v293_v21 = vld [vmem:[%s439_s1 + $0x90] ss:$8 sps:$4 sm:$0xff]   ;;  %v294_v22 = vld [vmem:[%s439_s1 + $0xa4] ss:$8 sps:$4 sm:$0xff]   ;;  %v296_v23 = vld [vmem:[%s439_s1 + $0xa0] ss:$8 sps:$4 sm:$0xff]  }
  0x15   :  { %v297_v24 = vld [vmem:[%s439_s1 + $0xb4] ss:$8 sps:$4 sm:$0xff]   ;;  %v299_v25 = vld [vmem:[%s439_s1 + $0xb0] ss:$8 sps:$4 sm:$0xff]   ;;  %v16_v26 = vld [vmem:[%s438_s0] sm:$0xff]  ;;  %v47_v29 = vshrl.u32 %v46_v28, 7 }
  0x16   :  { %v18_v27 = vpack.c.bf16 %v16_v26, %v16_v26  ;;  %v44_v31 = vld [vmem:[%s440_s2] sm:$0x3]  ;;  %s324_s12 = smov [#allocation2]   ;;  %vm222_vm1 = vcmask 130048  }
  0x17   :  { %191 = vmatpush1.bf16.msra.mxu0 %v281_v13  ;;  %v48_v30 = vsub.s32 0, %v47_v29  ;;  %v52_v32 = vsub.s32 1, %v47_v29  ;;  %s230_s1 = sshll.u32 %s324_s12, 4  ;;  %s231_s1 = int_to_ptr.vmem [resolvable:$true] %s230_s1 }
  0x18   :  { %192 = vmatprep.subr.bf16.mxu0 %v282_v14  ;;  %s300_s0 = scalar_lea.vmem %s231_s1, 256  ;;  %p305_p1 = scmp.lt.s32.totalorder %s231_s1, %s231_s1 }
  0x19   :  { %v49_v33 = vrot.slane %v44_v31, %v48_v30  ;;  %v53_v34 = vrot.slane %v44_v31, %v52_v32  ;;  %p301_p0 = scmp.ne.s32.totalorder %s231_s1, %s300_s0  ;;  %p306_p2 = scmp.lt.s32.totalorder %s300_s0, %s300_s0 }
  0x1b   :  { %193 = vmatpush1.bf16.msra.mxu0 %v284_v15  ;;  %p307_p3 = por %p306_p2, %p305_p1 }
  0x1c   :  { %194 = vmatprep.subr.bf16.mxu0 %v285_v16 }
  0x1d   :  { %p308_p4 = pnand %p307_p3, %p301_p0 }
  0x1f   :  { %195 = vmatpush1.bf16.msra.mxu0 %v287_v17 }
  0x20   :  { %196 = vmatprep.subr.bf16.mxu0 %v288_v18 }
  0x23   :  { %197 = vmatpush1.bf16.msra.mxu0 %v290_v19 }
  0x24   :  { %198 = vmatprep.subr.bf16.mxu0 %v291_v20 }
  0x27   :  { %199 = vmatpush1.bf16.msra.mxu0 %v293_v21 }
  0x28   :  { %200 = vmatprep.subr.bf16.mxu0 %v294_v22 }
  0x2b   :  { %201 = vmatpush1.bf16.msra.mxu0 %v296_v23 }
  0x2c   :  { %202 = vmatprep.subr.bf16.mxu0 %v297_v24 }
  0x2f   :  { %203 = vmatpush1.bf16.msra.mxu0 %v299_v25 }
  0x32   :  { %213 = vmatmul.mubr.bf16.vlgmr.msra.gmra.mrb[0].mxu0 %v18_v27 }
 0x105   :  { %v214_v35 = vpop.f32.mrb[0].mxu0 }
 0x106   :  { %v215_v36 = vadd.f32 %v214_v35, %v49_v33  ;;  %v216_v37 = vpop.f32.mrb[1].mxu0 }
 0x107   :  { %v217_v38 = vadd.f32 %v216_v37, %v53_v34  ;;  %v218_v39 = vpop.f32.mrb[2].mxu0 }
 0x108   :  { %221 = vst [vmem:[#allocation2] sm:$0xff] %v215_v36  ;;  %v219_v40 = vpop.f32.mrb[3].mxu0 }
 0x109   :  { %223 = vst.msk [vmem:[#allocation2 + $0x8] sm:$0xff] %vm222_vm1, %v217_v38 }
 0x10a   :  { %311 = shalt.err (!%p308_p4)
}
 0x10b   :  { %s312_s14 = scalar_lea.hbm %s441_s3, 256 }
 0x10c   :  { %p313_p5 = scmp.ne.s32.totalorder %s441_s3, %s312_s14  ;;  %p316_p6 = scmp.lt.u32.totalorder %s312_s14, %s441_s3 }
 0x10e   :  { %p318_p7 = pnand %p316_p6, %p313_p5 }
 0x110   :  { %321 = shalt.err (!%p318_p7)
}
 0x111   :  { %233 = dma.vmem_to_hbm [thread:$0]  %s231_s1, 256, %s441_s3, [#allocation3]  }
 0x112   :  { %322 = dma.done.wait [#allocation3], 256  }
 0x113   :  { %323 = vsyncadd [#allocation3], 4294967040 }
 0x114   :  { %237 = vsyncpa [#allocation3], 1 }

</bundles_post_ra>
